<compile_context>
chip_gen: v5e
topology: v5e:2x2
jax: 0.10.0
libtpu: 0.0.40
codegen_flags: <defaults>
</compile_context>

<pallas_src>
import functools

import jax
import jax.numpy as jnp
from jax.experimental import pallas as pl
from jax.experimental.pallas import tpu as pltpu

LN_EPS = 1e-5


def _sublayer_connection_kernel(seed_ref, x_ref, gamma_ref, beta_ref,
                                w_ref, b_ref, o_ref, *,
                                dropout_p, training, block_rows):
    """One row-tile: out = x + dropout(Linear(LayerNorm(x)))."""
    xf = x_ref[...].astype(jnp.float32)                       # [TM, D]

    # --- LayerNorm over the lane axis ---
    mean = jnp.mean(xf, axis=-1, keepdims=True)
    centered = xf - mean
    var = jnp.mean(centered * centered, axis=-1, keepdims=True)
    xn = centered * jax.lax.rsqrt(var + LN_EPS)
    xn = xn * gamma_ref[...].astype(jnp.float32) + beta_ref[...].astype(jnp.float32)

    # --- sublayer Linear(dim, dim): narrow (bf16) operands on the MXU, f32 accumulate ---
    h = jnp.dot(xn.astype(w_ref.dtype), w_ref[...],
                preferred_element_type=jnp.float32)
    h = h + b_ref[...].astype(jnp.float32)

    # --- inverted dropout via counter-based integer hash (no hardware PRNG needed) ---
    if training and dropout_p > 0.0:
        tm, dim = h.shape
        row = jax.lax.broadcasted_iota(jnp.uint32, (tm, dim), 0)
        col = jax.lax.broadcasted_iota(jnp.uint32, (tm, dim), 1)
        # Global row index -> every grid tile gets an independent (grid-invariant) mask.
        grow = row + pl.program_id(0).astype(jnp.uint32) * jnp.uint32(block_rows)
        seed = seed_ref[0].astype(jnp.uint32)
        z = (grow * jnp.uint32(0x9E3779B9)
             + col * jnp.uint32(0x85EBCA6B)
             + seed * jnp.uint32(0xC2B2AE35))
        z = z ^ (z >> jnp.uint32(16))
        z = z * jnp.uint32(0x7FEB352D)
        z = z ^ (z >> jnp.uint32(15))
        z = z * jnp.uint32(0x846CA68B)
        z = z ^ (z >> jnp.uint32(16))
        # Integer-domain keep test: P(keep) = 1 - p (p quantized to 2^-32).
        thresh = jnp.uint32(min(int(dropout_p * 4294967296.0), 0xFFFFFFFF))
        keep = z >= thresh
        h = jnp.where(keep, h * jnp.float32(1.0 / (1.0 - dropout_p)),
                      jnp.float32(0.0))

    # --- residual add ---
    o_ref[...] = (xf + h).astype(o_ref.dtype)


def sublayer_connection(x, gamma, beta, w, b, *, dropout_p=0.0, training=False,
                        seed=0, block_rows=512, mxu_dtype=jnp.bfloat16):
    """x: [batch, seq, dim]; gamma/beta/b: [dim]; w: [dim, dim]."""
    batch, seq, dim = x.shape
    rows = batch * seq
    x2 = x.reshape(rows, dim)

    # Row tile: biggest of (block_rows, rows), forced to a multiple of 8 sublanes.
    tm = int(min(block_rows, rows))
    tm = max(8, (tm // 8) * 8)
    padded_rows = -(-rows // tm) * tm
    if padded_rows != rows:
        x2 = jnp.pad(x2, ((0, padded_rows - rows), (0, 0)))
    grid = (padded_rows // tm,)

    gamma2 = gamma.reshape(1, dim).astype(jnp.float32)
    beta2 = beta.reshape(1, dim).astype(jnp.float32)
    b2 = b.reshape(1, dim).astype(jnp.float32)
    w_m = w.astype(mxu_dtype)                       # resident weight, half footprint in bf16
    seed_arr = jnp.asarray([seed], dtype=jnp.int32)

    # VMEM budget: resident W + double-buffered in/out tiles + f32 intermediates.
    itemsize = x2.dtype.itemsize
    vmem_needed = (w_m.size * w_m.dtype.itemsize
                   + 2 * tm * dim * itemsize        # input double buffer
                   + 2 * tm * dim * itemsize        # output double buffer
                   + 6 * tm * dim * 4               # f32 intermediates headroom
                   + (4 << 20))
    vmem_limit = int(min(max(vmem_needed, 32 << 20), 60 << 20))  # stay under v7x's 64 MiB

    cost = pl.CostEstimate(
        flops=2 * padded_rows * dim * dim,
        transcendentals=padded_rows,
        bytes_accessed=int(2 * padded_rows * dim * itemsize
                           + w_m.size * w_m.dtype.itemsize + 3 * dim * 4),
    )

    kernel = functools.partial(_sublayer_connection_kernel,
                               dropout_p=float(dropout_p),
                               training=bool(training),
                               block_rows=tm)

    out2 = pl.pallas_call(
        kernel,
        out_shape=jax.ShapeDtypeStruct((padded_rows, dim), x.dtype),
        grid_spec=pltpu.PrefetchScalarGridSpec(
            num_scalar_prefetch=1,
            grid=grid,
            in_specs=[
                pl.BlockSpec((tm, dim), lambda i, s: (i, 0)),    # x row tile
                pl.BlockSpec((1, dim), lambda i, s: (0, 0)),     # gamma (resident)
                pl.BlockSpec((1, dim), lambda i, s: (0, 0)),     # beta  (resident)
                pl.BlockSpec((dim, dim), lambda i, s: (0, 0)),   # W     (resident)
                pl.BlockSpec((1, dim), lambda i, s: (0, 0)),     # bias  (resident)
            ],
            out_specs=pl.BlockSpec((tm, dim), lambda i, s: (i, 0)),
        ),
        compiler_params=pltpu.CompilerParams(
            dimension_semantics=("parallel",),        # megacore sharding on v7x
            vmem_limit_bytes=vmem_limit),
        cost_estimate=cost,
        # Note: input_output_aliases for x was considered (review item) but omitted to
        # keep the padded-shape path simple; the win is marginal for these shapes.
    )(seed_arr, x2, gamma2, beta2, w_m, b2)

    return out2[:rows].reshape(batch, seq, dim)


def _reference_eval(x, gamma, beta, w, b):
    """Pure-JAX reference for eval mode (dropout = identity)."""
    mean = jnp.mean(x, axis=-1, keepdims=True)
    var = jnp.mean((x - mean) ** 2, axis=-1, keepdims=True)
    xn = (x - mean) / jnp.sqrt(var + LN_EPS) * gamma + beta
    h = jnp.einsum("bsd,de->bse", xn, w) + b
    return x + h


if __name__ == "__main__":
    key = jax.random.PRNGKey(0)
    batch, seq, dim = 2, 8, 128          # lane-dense (dim multiple of 128)
    dropout = 0.1

    k_x, k_w, k_b = jax.random.split(key, 3)
    x = jax.random.normal(k_x, (batch, seq, dim), dtype=jnp.float32)

    # Parameters (deterministic init). LayerNorm defaults: gamma=1, beta=0.
    gamma = jnp.ones((dim,), dtype=jnp.float32)
    beta = jnp.zeros((dim,), dtype=jnp.float32)
    w = jax.random.normal(k_w, (dim, dim), dtype=jnp.float32) * (1.0 / dim ** 0.5)
    b = jax.random.normal(k_b, (dim,), dtype=jnp.float32) * 0.01

    ref = _reference_eval(x, gamma, beta, w, b)

    # 1) Eval mode, exact f32 matmul, multi-tile grid (block_rows=8 -> 2 row tiles).
    out_f32 = sublayer_connection(x, gamma, beta, w, b, dropout_p=dropout,
                                  training=False, block_rows=8,
                                  mxu_dtype=jnp.float32)
    out_f32 = jax.block_until_ready(out_f32)
    assert out_f32.shape == (batch, seq, dim)
    assert jnp.allclose(out_f32, ref, atol=1e-4, rtol=1e-4), "eval (f32) mismatch"

    # 2) Eval mode, default bf16 MXU operands (f32 accumulation) -> loose tolerance.
    out_bf16 = sublayer_connection(x, gamma, beta, w, b, dropout_p=dropout,
                                   training=False)
    out_bf16 = jax.block_until_ready(out_bf16)
    assert jnp.allclose(out_bf16, ref, atol=5e-2, rtol=5e-2), "eval (bf16) mismatch"

    # 3) Training mode (stochastic dropout via in-kernel hash RNG), multi-tile grid.
    out_train = sublayer_connection(x, gamma, beta, w, b, dropout_p=dropout,
                                    training=True, seed=1234, block_rows=8)
    out_train = jax.block_until_ready(out_train)
    assert out_train.shape == (batch, seq, dim)
    assert bool(jnp.all(jnp.isfinite(out_train)))
    # Dropped elements leave the residual unchanged -> delta is exactly zero there.
    drop_frac = float(jnp.mean((out_train - x == 0.0).astype(jnp.float32)))
    assert 0.01 < drop_frac < 0.35, f"dropout fraction looks wrong: {drop_frac}"

    print("KERNEL_OK")
</pallas_src>

<mosaic_0001>
module attributes {stable_mosaic.version = 11 : i64} {
  func.func @_sublayer_connection_kernel(%arg0: i32, %arg1: memref<1xi32, #tpu.memory_space<smem>>, %arg2: memref<8x128xf32, #tpu.memory_space<vmem>>, %arg3: memref<1x128xf32, #tpu.memory_space<vmem>>, %arg4: memref<1x128xf32, #tpu.memory_space<vmem>>, %arg5: memref<128x128xf32, #tpu.memory_space<vmem>>, %arg6: memref<1x128xf32, #tpu.memory_space<vmem>>, %arg7: memref<8x128xf32, #tpu.memory_space<vmem>>) attributes {dimension_semantics = [#tpu.dimension_semantics<parallel>], iteration_bounds = array<i64: 2>, scalar_prefetch = 1 : i64, scratch_operands = 0 : i64, tpu.core_type = #tpu.core_type<tc>, window_params = [{transform_indices = @transform_0, window_bounds = array<i64: 8, 128>}, {pipeline_mode = #tpu.pipeline_mode<synchronous>, transform_indices = @transform_1, window_bounds = array<i64: 1, 128>}, {pipeline_mode = #tpu.pipeline_mode<synchronous>, transform_indices = @transform_2, window_bounds = array<i64: 1, 128>}, {pipeline_mode = #tpu.pipeline_mode<synchronous>, transform_indices = @transform_3, window_bounds = array<i64: 128, 128>}, {pipeline_mode = #tpu.pipeline_mode<synchronous>, transform_indices = @transform_4, window_bounds = array<i64: 1, 128>}, {transform_indices = @transform_5, window_bounds = array<i64: 8, 128>}]} {
    %c0 = arith.constant 0 : index
    %c0_0 = arith.constant 0 : index
    %0 = vector.load %arg2[%c0, %c0_0] : memref<8x128xf32, #tpu.memory_space<vmem>>, vector<8x128xf32>
    %cst = arith.constant dense<0.000000e+00> : vector<8xf32>
    %1 = vector.multi_reduction <add>, %0, %cst [1] : vector<8x128xf32> to vector<8xf32>
    %2 = vector.shape_cast %1 : vector<8xf32> to vector<8x1xf32>
    %cst_1 = arith.constant 1.280000e+02 : f32
    %3 = vector.broadcast %cst_1 : f32 to vector<8x1xf32>
    %4 = arith.divf %2, %3 : vector<8x1xf32>
    %5 = vector.broadcast %4 : vector<8x1xf32> to vector<8x128xf32>
    %6 = arith.subf %0, %5 : vector<8x128xf32>
    %7 = arith.mulf %6, %6 : vector<8x128xf32>
    %cst_2 = arith.constant dense<0.000000e+00> : vector<8xf32>
    %8 = vector.multi_reduction <add>, %7, %cst_2 [1] : vector<8x128xf32> to vector<8xf32>
    %9 = vector.shape_cast %8 : vector<8xf32> to vector<8x1xf32>
    %cst_3 = arith.constant 1.280000e+02 : f32
    %10 = vector.broadcast %cst_3 : f32 to vector<8x1xf32>
    %11 = arith.divf %9, %10 : vector<8x1xf32>
    %cst_4 = arith.constant 9.99999974E-6 : f32
    %12 = vector.broadcast %cst_4 : f32 to vector<8x1xf32>
    %13 = arith.addf %11, %12 : vector<8x1xf32>
    %14 = math.rsqrt %13 : vector<8x1xf32>
    %15 = vector.broadcast %14 : vector<8x1xf32> to vector<8x128xf32>
    %16 = arith.mulf %6, %15 : vector<8x128xf32>
    %c0_5 = arith.constant 0 : index
    %c0_6 = arith.constant 0 : index
    %17 = vector.load %arg3[%c0_5, %c0_6] : memref<1x128xf32, #tpu.memory_space<vmem>>, vector<1x128xf32>
    %18 = vector.broadcast %17 : vector<1x128xf32> to vector<8x128xf32>
    %19 = arith.mulf %16, %18 : vector<8x128xf32>
    %c0_7 = arith.constant 0 : index
    %c0_8 = arith.constant 0 : index
    %20 = vector.load %arg4[%c0_7, %c0_8] : memref<1x128xf32, #tpu.memory_space<vmem>>, vector<1x128xf32>
    %21 = vector.broadcast %20 : vector<1x128xf32> to vector<8x128xf32>
    %22 = arith.addf %19, %21 : vector<8x128xf32>
    %c0_9 = arith.constant 0 : index
    %c0_10 = arith.constant 0 : index
    %23 = vector.load %arg5[%c0_9, %c0_10] : memref<128x128xf32, #tpu.memory_space<vmem>>, vector<128x128xf32>
    %cst_11 = arith.constant dense<0.000000e+00> : vector<8x128xf32>
    %24 = tpu.matmul %22, %23, %cst_11 {dimension_numbers = #tpu.dot_dimension_numbers<[1], [0], [0], [1], [0, 0, 1, 1], [], []>} : vector<8x128xf32>, vector<128x128xf32>, vector<8x128xf32> -> vector<8x128xf32>
    %c0_12 = arith.constant 0 : index
    %c0_13 = arith.constant 0 : index
    %25 = vector.load %arg6[%c0_12, %c0_13] : memref<1x128xf32, #tpu.memory_space<vmem>>, vector<1x128xf32>
    %26 = vector.broadcast %25 : vector<1x128xf32> to vector<8x128xf32>
    %27 = arith.addf %24, %26 : vector<8x128xf32>
    %28 = arith.addf %0, %27 : vector<8x128xf32>
    %c0_14 = arith.constant 0 : index
    %c0_15 = arith.constant 0 : index
    %29 = vector.load %arg7[%c0_14, %c0_15] : memref<8x128xf32, #tpu.memory_space<vmem>>, vector<8x128xf32>
    tpu.vector_store %arg7[%c0_14, %c0_15], %28 {strides = array<i32>} : memref<8x128xf32, #tpu.memory_space<vmem>>, vector<8x128xf32>,
    return
  }
  func.func @transform_0(%arg0: i32, %arg1: memref<1xi32, #tpu.memory_space<smem>>) -> (i32, i32) {
    %c0_i32 = arith.constant 0 : i32
    %c0_i32_0 = arith.constant 0 : i32
    return %arg0, %c0_i32 : i32, i32
  }
  func.func @transform_1(%arg0: i32, %arg1: memref<1xi32, #tpu.memory_space<smem>>) -> (i32, i32) {
    %c0_i32 = arith.constant 0 : i32
    %c0_i32_0 = arith.constant 0 : i32
    %c0_i32_1 = arith.constant 0 : i32
    return %c0_i32, %c0_i32_0 : i32, i32
  }
  func.func @transform_2(%arg0: i32, %arg1: memref<1xi32, #tpu.memory_space<smem>>) -> (i32, i32) {
    %c0_i32 = arith.constant 0 : i32
    %c0_i32_0 = arith.constant 0 : i32
    %c0_i32_1 = arith.constant 0 : i32
    return %c0_i32, %c0_i32_0 : i32, i32
  }
  func.func @transform_3(%arg0: i32, %arg1: memref<1xi32, #tpu.memory_space<smem>>) -> (i32, i32) {
    %c0_i32 = arith.constant 0 : i32
    %c0_i32_0 = arith.constant 0 : i32
    %c0_i32_1 = arith.constant 0 : i32
    return %c0_i32, %c0_i32_0 : i32, i32
  }
  func.func @transform_4(%arg0: i32, %arg1: memref<1xi32, #tpu.memory_space<smem>>) -> (i32, i32) {
    %c0_i32 = arith.constant 0 : i32
    %c0_i32_0 = arith.constant 0 : i32
    %c0_i32_1 = arith.constant 0 : i32
    return %c0_i32, %c0_i32_0 : i32, i32
  }
  func.func @transform_5(%arg0: i32, %arg1: memref<1xi32, #tpu.memory_space<smem>>) -> (i32, i32) {
    %c0_i32 = arith.constant 0 : i32
    %c0_i32_0 = arith.constant 0 : i32
    return %arg0, %c0_i32 : i32, i32
  }
}

</mosaic_0001>

<bundles_post_ra>
// kernel: tpu_custom_call.1
= control target key start
LH: loop header
LB: loop body
LE: loop exit
PB: predicated region body
PF: predicated region fallthrough
CT: control target
= control target key end

     0   :  { %12 = vsyncpa [#allocation5], 0  ;;  %s843_s0 = inlined_call_operand.<no memory space> [shape: s32[1], index: 0, kind: input, shape index: {}]   ;;  %s844_s1 = inlined_call_operand.hbm [shape: f32[16,128], index: 1, kind: input, shape index: {}]   ;;  %s845_s2 = inlined_call_operand.vmem [shape: f32[1,128], index: 2, kind: input, shape index: {}]   ;;  %s846_s3 = inlined_call_operand.vmem [shape: f32[1,128], index: 3, kind: input, shape index: {}]   ;;  %s847_s4 = inlined_call_operand.hbm [shape: f32[128,128], index: 4, kind: input, shape index: {}]   ;;  %s848_s5 = inlined_call_operand.vmem [shape: f32[1,128], index: 5, kind: input, shape index: {}]   ;;  %s849_s6 = inlined_call_operand.hbm [shape: f32[16,128], index: 6, kind: output, shape index: {}]  }
   0x1   :  { %14 = vsyncpa [#allocation5 + $0x1], 0 }
   0x2   :  { %15 = vsyncpa [#allocation8], 0 }
   0x3   :  { %16 = vsyncpa [#allocation6], 0 }
   0x4   :  { %18 = vsyncpa [#allocation6 + $0x1], 0  ;;  %s689_s0 = smov 0   ;;  %s691_s21 = smov 0  }
   0x5   :  { %s693_s22 = smov 0   ;;  %s695_s23 = smov 0  }
   0x6 LB: > { %s182_s26 = sshll.u32 %s847_s4, 4  ;;  %s713_s27 = sadd.s32 4294967295, %s648_s23   ;;  %s648_s23 = sphi %s695_s23, %s859_s23   ;;  %s644_s22 = sphi %s693_s22, %s858_s22   ;;  %s640_s21 = sphi %s691_s21, %s857_s21   ;;  %s636_s0 = sphi %s689_s0, %s856_s0   ;;  %s183_s26 = int_to_ptr.hbm [resolvable:$true] %s182_s26 }
   0x7   : > { %p438_p0 = scmp.ge.s32.totalorder %s648_s23, 1  ;;  %p45_p1 = scmp.eq.s32.totalorder %s713_s27, 0 }
   0x8   : > { %p165_p2 = scmp.lt.s32.totalorder %s648_s23, 3  ;;  %s650_s29 = smov [#allocation7]  }
   0x9   : > { %s184_s30 = sshll.u32 %s650_s29, 4  ;;  %s651_s7 = smov 128   ;;  %s185_s30 = int_to_ptr.vmem [resolvable:$true] %s184_s30 }
   0xa   : > { %p718_p3 = pnand %p438_p0, %p165_p2  ;;  %s652_s8 = smov 8  }
   0xb   : > { %s437_s9 = sadd.s32 4294967294, %s648_s23   ;;  %s729_s10 = sadd.s32 1, %s648_s23  }
   0xc   : > { %p459_p4 = pneg %p718_p3  ;;  %s31_s11 = sadd.s32 1, %s644_s22 }
   0xd   : > { %s28_s12 = ssub.s32 %s648_s23, %s729_s10  ;;  %p38_p7 = scmp.ne.s32.totalorder %s644_s22, %s640_s21 }
   0xe   : > { %p460_p6 = pnand %p459_p4, %p45_p1  ;;  %p29_p8 = scmp.eq.s32.totalorder %s28_s12, 0 }
   0xf   : > { %p39_p9 = scmp.eq.s32.totalorder %s648_s23, 0  ;;  %p44_p10 = scmp.ne.s32.totalorder %s640_s21, %s636_s0 }
  0x10   : > { %462 = dma.hbm_to_vmem [thread:$0]  (!%p460_p6), %s183_s26, 2048, %s185_s30, [#allocation8], %s651_s7, %s651_s7, %s652_s8  }
  0x11   : > { %p152_p11 = scmp.eq.s32.totalorder %s713_s27, 1  ;;  %p745_p12 = por %p45_p1, %p44_p10 }
  0x12   : > { %s741_s13 = scalar_select %p29_p8, %s644_s22, %s31_s11  }
  0x13   : > { %p749_p13 = por %p152_p11, %p38_p7  ;;  %p158_p0 = scmp.eq.s32.totalorder %s437_s9, 1 }
  0x14   : > { %p40_p2 = por %p39_p9, %p38_p7  ;;  %s201_s16 = sand.u32 1, %s644_s22  }
  0x15   : > { %p754_p4 = por %p158_p0, %p44_p10  ;;  %p472_p6 = scmp.lt.s32.totalorder %s648_s23, 2 }
  0x16   : > { %s441_s18 = sshll.u32 %s201_s16, 3  ;;  %s442_s19 = sshll.u32 %s648_s23, 3 }
  0x17   : > { %s209_s25 = scalar_lea.hbm %s844_s1, %s442_s19  ;;  %s205_s29 = scalar_lea.vmem [#allocation4], %s441_s18 }
  0x18   : > { %s211_s26 = sshll.u32 %s209_s25, 4  ;;  %s213_s30 = sshll.u32 %s205_s29, 4  ;;  %s212_s26 = int_to_ptr.hbm [resolvable:$true] %s211_s26  ;;  %s214_s30 = int_to_ptr.vmem [resolvable:$true] %s213_s30 }
  0x19   : > { %p763_p8 = pnand %p472_p6, %p40_p2  ;;  %s202_s8 = scalar_lea.sflag [#allocation5], %s201_s16 }
  0x1a   : > { %s548_s9 = sshra.s32 %s212_s26, 4  ;;  %s555_s18 = scalar_lea.hbm %s844_s1, 16  ;;  %s549_s9 = int_to_ptr.hbm [resolvable:$true] %s548_s9 }
  0x1b   : > { %s550_s11 = scalar_lea.hbm %s549_s9, 8  ;;  %p552_p9 = pneg %p763_p8 }
  0x1c   : > { %p551_p7 = scmp.ne.s32.totalorder %s549_s9, %s550_s11  ;;  %p556_p0 = scmp.lt.s32.totalorder %s549_s9, %s844_s1 }
  0x1d   : > { %p557_p2 = scmp.lt.s32.totalorder %s555_s18, %s550_s11 }
  0x1e   : > { %p553_p10 = pnand %p552_p9, %p551_p7 }
  0x1f   : > { %p558_p6 = por %p557_p2, %p556_p0 }
  0x20   : > { %p554_p11 = pneg %p553_p10 }
  0x22   : > { %p559_p5 = pnand %p558_p6, %p554_p11 }
  0x24   : > { %562 = shalt.err (!%p559_p5)
}
  0x25   : > { %466 = dma.hbm_to_vmem [thread:$0]  (!%p763_p8), %s212_s26, 128, %s214_s30, %s202_s8  }
  0x26   : > { %222 = sbr.rel (%p718_p3) target bundleno = 446 (0x1be), region = 40  ;;  %s780_s16 = sand.u32 (!%p718_p3), 1, %s640_s21  }
  0x27   : > { %s444_s25 = sshll.u32 (!%p718_p3), %s780_s16, 3  ;;  %s225_s29 = scalar_lea.sflag (!%p718_p3), [#allocation5], %s780_s16 }
  0x28   : > { %s228_s9 = scalar_lea.vmem (!%p718_p3), [#allocation4], %s444_s25 }
  0x2b   : > { %623 = dma.done.wait (%p745_p12), %s225_s29, 128  }
  0x2c   : > { %625 = vsyncadd (%p745_p12), %s225_s29, 4294967168 }
  0x2d   : > { %627 = dma.done.wait (%p45_p1), [#allocation8], 2048  }
  0x2e   : > { %629 = vsyncadd (%p45_p1), [#allocation8], 4294965248  ;;  %v794_v0 = vld [vmem:[%s228_s9] sm:$0xff]  ;;  %v653_v1 = vmov 128.0   ;;  %v312_v14 = vld [vmem:[#allocation7 + $0x68] sm:$0xff]  ;;  %s448_s7 = sshll.u32 %s713_s27, 3 }
  0x2f   : > { %262 = vadd.xlane.f32.xlu0 %v794_v0  ;;  %514 = vrcp.f32 %v653_v1  ;;  %v314_v2 = vld [vmem:[#allocation7 + $0x78] sm:$0xff]  ;;  %v313_v3 = vld [vmem:[#allocation7 + $0x70] sm:$0xff]  ;;  %v311_v15 = vld [vmem:[#allocation7 + $0x60] sm:$0xff]  ;;  %s352_s18 = scalar_lea.hbm %s849_s6, %s448_s7  ;;  %s260_s20 = scalar_lea.vmem [#allocation9], %s444_s25 }
  0x30   : > { %319 = vmatpush.msra.mxu0 %v314_v2  ;;  %v310_v16 = vld [vmem:[#allocation7 + $0x58] sm:$0xff]  ;;  %v309_v17 = vld [vmem:[#allocation7 + $0x50] sm:$0xff]  ;;  %v308_v18 = vld [vmem:[#allocation7 + $0x48] sm:$0xff]  ;;  %s354_s24 = sshll.u32 %s260_s20, 4  ;;  %s356_s29 = sshll.u32 %s352_s18, 4  ;;  %s355_s24 = int_to_ptr.vmem [resolvable:$true] %s354_s24  ;;  %s357_s29 = int_to_ptr.hbm [resolvable:$true] %s356_s29 }
  0x31   : > { %v307_v19 = vld [vmem:[#allocation7 + $0x40] sm:$0xff]  ;;  %v306_v20 = vld [vmem:[#allocation7 + $0x38] sm:$0xff]  ;;  %v305_v21 = vld [vmem:[#allocation7 + $0x30] sm:$0xff]  ;;  %s342_s27 = scalar_lea.sflag [#allocation6], %s780_s16  ;;  %s592_s9 = sshra.s32 %s357_s29, 4  ;;  %s593_s9 = int_to_ptr.hbm [resolvable:$true] %s592_s9 }
  0x32   : > { %320 = vmatpush.msra.mxu0 %v313_v3  ;;  %v304_v22 = vld [vmem:[#allocation7 + $0x28] sm:$0xff]  ;;  %v303_v23 = vld [vmem:[#allocation7 + $0x20] sm:$0xff]  ;;  %v302_v24 = vld [vmem:[#allocation7 + $0x18] sm:$0xff]  ;;  %s594_s28 = scalar_lea.hbm %s593_s9, 8  ;;  %s598_s25 = scalar_lea.hbm %s849_s6, 16 }
  0x33   : > { %v301_v25 = vld [vmem:[#allocation7 + $0x10] sm:$0xff]  ;;  %v300_v26 = vld [vmem:[#allocation7 + $0x8] sm:$0xff]  ;;  %v299_v27 = vld [vmem:[#allocation7] sm:$0xff]  ;;  %p595_p1 = scmp.ne.s32.totalorder %s593_s9, %s594_s28  ;;  %p599_p12 = scmp.lt.s32.totalorder %s593_s9, %s849_s6 }
  0x34   : > { %321 = vmatpush.msra.mxu0 %v312_v14  ;;  %v511_v37 = vld [vmem:[%s845_s2] ss:$0 sm:$0xff]  ;;  %p600_p8 = scmp.lt.s32.totalorder %s598_s25, %s594_s28 }
  0x35   : > { %v515_v4 = vpop.eup %514  ;;  %v512_v40 = vld [vmem:[%s846_s3] ss:$0 sm:$0xff]  ;;  %p596_p3 = pnand %p595_p1, %p749_p13 }
  0x36   : > { %v265_v5 = vmul.f32 128.0, %v515_v4  ;;  %vm269_vm0 = vweird.f32 %v515_v4  ;;  %322 = vmatpush.msra.mxu0 %v311_v15  ;;  %v513_v43 = vld [vmem:[%s848_s5] ss:$0 sm:$0xff]  ;;  %p601_p7 = por %p600_p8, %p599_p12 }
  0x37   : > { %p597_p5 = pneg %p596_p3 }
  0x38   : > { %v266_v6 = vsub.f32 1.0, %v265_v5  ;;  %323 = vmatpush.msra.mxu0 %v310_v16 }
  0x39   : > { %p602_p9 = pnand %p601_p7, %p597_p5 }
  0x3a   : > { %v267_v7 = vmul.f32 %v515_v4, %v266_v6  ;;  %324 = vmatpush.msra.mxu0 %v309_v17 }
  0x3c   : > { %v268_v8 = vadd.f32 %v515_v4, %v267_v7  ;;  %325 = vmatpush.msra.mxu0 %v308_v18 }
  0x3e   : > { %v270_v9 = vsel %vm269_vm0, %v515_v4, %v268_v8  ;;  %326 = vmatpush.msra.mxu0 %v307_v19 }
  0x40   : > { %327 = vmatpush.msra.mxu0 %v306_v20 }
  0x42   : > { %328 = vmatpush.msra.mxu0 %v305_v21 }
  0x44   : > { %329 = vmatpush.msra.mxu0 %v304_v22 }
  0x46   : > { %330 = vmatpush.msra.mxu0 %v303_v23 }
  0x48   : > { %331 = vmatpush.msra.mxu0 %v302_v24 }
  0x4a   : > { %332 = vmatpush.msra.mxu0 %v301_v25 }
  0x4c   : > { %333 = vmatpush.msra.mxu0 %v300_v26 }
  0x4e   : > { %334 = vmatpush.msra.mxu0 %v299_v27 }
  0xa2   : > { %v263_v10 = vpop.xlane.xlu0 %262 }
  0xa3   : > { %v271_v11 = vmul.f32 %v270_v9, %v263_v10 }
  0xa5   : > { %v272_v12 = vsub.f32 %v794_v0, %v271_v11 }
  0xa7   : > { %v273_v13 = vmul.f32 %v272_v12, %v272_v12 }
  0xa9   : > { %274 = vadd.xlane.f32.xlu0 %v273_v13 }
 0x11c   : > { %v275_v28 = vpop.xlane.xlu0 %274 }
 0x11d   : > { %v276_v29 = vmul.f32 %v275_v28, %v270_v9 }
 0x11f   : > { %v277_v30 = vadd.f32 1e-05, %v276_v29 }
 0x121   : > { %516 = vrsqrt.f32 %v277_v30  ;;  %vm284_vm2 = vweird.f32 %v277_v30 }
 0x127   : > { %v517_v31 = vpop.eup %516 }
 0x128   : > { %v279_v32 = vmul.f32 %v517_v31, %v277_v30  ;;  %vm285_vm1 = vweird.f32 %v517_v31 }
 0x129   : > { %vm286_vm3 = vmor %vm284_vm2, %vm285_vm1 }
 0x12a   : > { %v280_v33 = vmul.f32 %v517_v31, %v279_v32 }
 0x12c   : > { %v281_v34 = vmul.f32 0.5, %v280_v33 }
 0x12e   : > { %v282_v35 = vsub.f32 1.5, %v281_v34 }
 0x130   : > { %v283_v36 = vmul.f32 %v517_v31, %v282_v35 }
 0x132   : > { %v287_v38 = vsel %vm286_vm3, %v517_v31, %v283_v36 }
 0x133   : > { %v288_v39 = vmul.f32 %v287_v38, %v272_v12 }
 0x135   : > { %v293_v41 = vmul.f32 %v511_v37, %v288_v39 }
 0x137   : > { %v298_v42 = vadd.f32 %v512_v40, %v293_v41 }
 0x139   : > { %335 = vmatmul.f32.vlgmr.msra.gmra.mxu0 %v298_v42 }
 0x1b6   : > { %v336_v44 = vpop.f32.mrf.mxu0 }
 0x1b7   : > { %v337_v45 = vadd.f32 %v513_v43, %v336_v44 }
 0x1b9   : > { %v339_v46 = vadd.f32 %v337_v45, %v794_v0 }
 0x1bb   : > { %340 = vst [vmem:[%s260_s20] sm:$0xff] %v339_v46 }
 0x1bc   : > { %605 = shalt.err (!%p602_p9)
}
 0x1bd   : > { %457 = dma.vmem_to_hbm [thread:$0]  (%p749_p13), %s355_s24, 128, %s357_s29, %s342_s27  }
 0x1be PF: > { %s368_s16 = sand.u32 1, %s636_s0   ;;  %p855_p10 = scmp.ge.s32.totalorder %s648_s23, 2 }
 0x1bf   : > { %s369_s8 = scalar_lea.sflag [#allocation6], %s368_s16 }
 0x1c0   : > { %p468_p11 = pnand %p855_p10, %p754_p4 }
 0x1c2   : > { %p469_p0 = pneg %p468_p11 }
 0x1c4   : > { %631 = dma.done.wait (%p469_p0), %s369_s8, 128  }
 0x1c5   : > { %633 = vsyncadd (%p469_p0), %s369_s8, 4294967168  ;;  %p21_p2 = scmp.ge.s32.totalorder %s729_s10, 4   ;;  %s856_s0 = smov %s640_s21 }
 0x1c6   : > { %s857_s21 = smov %s644_s22  ;;  %s858_s22 = smov %s741_s13 }
 0x1c7   : > { %s859_s23 = smov %s729_s10  ;;  %23 = sbr.rel (!%p21_p2) target bundleno = 6 (0x6), region = 89 }
 0x1cc   :  { %375 = vsyncpa [#allocation5], 1 }
 0x1cd   :  { %377 = vsyncpa [#allocation5 + $0x1], 1 }
 0x1ce   :  { %378 = vsyncpa [#allocation8], 1 }
 0x1cf   :  { %379 = vsyncpa [#allocation6], 1 }
 0x1d0   :  { %381 = vsyncpa [#allocation6 + $0x1], 1 }

</bundles_post_ra>
